<compile_context>
chip_gen: v7x
topology: tpu7x:2x2x1
jax: 0.10.0
libtpu: 0.0.40
codegen_flags: <defaults>
</compile_context>

<pallas_src>
import numpy as np
import jax
import jax.numpy as jnp
from jax.experimental import pallas as pl
from jax.experimental.pallas import tpu as pltpu

LEVELS = [8, 8, 5, 4, 4, 3]          # prod = 15360 -> codebook_size
D = len(LEVELS)                      # 6 FSQ channels
NMAX = 7                             # max n_val over the LTQSoft quantizers (lqt_8)

# Float-table column layout (one row per channel).
COL_TF = 0                           # [COL_TF   : COL_TF+NMAX)   forward thresholds (+inf pad)
COL_STEP = NMAX                      # [COL_STEP : COL_STEP+NMAX) step values chosen when exceeded
COL_S1 = 2 * NMAX                    # scale1
COL_S2 = 2 * NMAX + 1                # scale2
COL_BIAS = 2 * NMAX + 2              # bias
COL_LOW = 2 * NMAX + 3               # 'zero' buffer value (= low)
NCOL = 2 * NMAX + 4

R_MAX = 2048                         # rows of 128 lanes per block: (2048,128) f32 = 1 MiB


# ----------------------------------------------------------------------------
# Deterministic-init LTQSoft parameters (computed in numpy => kernel operands)
# ----------------------------------------------------------------------------
def _ltq_params(num_splits, up=1.0, low=-1.0):
    n_val = num_splits - 1
    interval = (up - low) / n_val
    len_wi = up - low
    eps = 1e-3
    a = np.full((n_val,), interval, np.float64)
    a_pos = np.where(a > eps, a, eps)
    a_pos = np.exp(a_pos - a_pos.max())
    a_pos = a_pos / a_pos.sum() * len_wi          # F.softmax * len_wi (uniform at init)
    tf, step = [], []
    sr = low
    for i in range(n_val):
        sr += interval                            # step_right += interval
        tf.append((low + a_pos[0] / 2) if i == 0
                  else (tf[-1] + a_pos[i - 1] / 2 + a_pos[i] / 2))
        step.append(sr)
    return dict(n_val=n_val,
                tf=np.asarray(tf, np.float32),
                step=np.asarray(step, np.float32),
                scale1=np.float32(1.0), scale2=np.float32(1.0),
                bias=np.float32(0.0), low=np.float32(low))


def _build_tables():
    p8, p5, p4, p3 = (_ltq_params(n) for n in (8, 5, 4, 3))
    # quantize() applies lqt_5 to the last channel (reproducing the original
    # module exactly), while codes_to_indices() uses lqt_3 for it.
    q_map = [p8, p8, p5, p4, p4, p5]

    ftab = np.zeros((D, NCOL), np.float32)
    ftab[:, COL_TF:COL_TF + NMAX] = np.inf        # sentinel: never exceeded
    for c, pq in enumerate(q_map):
        nv = pq['n_val']
        ftab[c, COL_TF:COL_TF + nv] = pq['tf']
        ftab[c, COL_STEP:COL_STEP + nv] = pq['step']
        ftab[c, COL_S1] = pq['scale1']
        ftab[c, COL_S2] = pq['scale2']
        ftab[c, COL_BIAS] = pq['bias']
        ftab[c, COL_LOW] = pq['low']
    itab = np.cumprod([1] + LEVELS[:-1]).astype(np.int32)   # [1,8,64,320,1280,5120]
    # channel-5 *index* quantizer (lqt_3): scale + its two thresholds as python scalars
    ch5 = (float(p3['scale1']), float(p3['tf'][0]), float(p3['tf'][1]))
    return ftab, itab, ch5


_FTAB, _ITAB, (_CH5_S1, _CH5_T0, _CH5_T1) = _build_tables()


# ----------------------------------------------------------------------------
# Kernel: one (R, 128) tile of one FSQ channel -> codes + fused index counts
# ----------------------------------------------------------------------------
def _fdq_kernel(ftab_ref, itab_ref, x_ref, codes_ref, idx_ref):
    c = pl.program_id(2)                           # FSQ channel handled by this step

    # per-channel scalars: SMEM -> sreg -> splat (no (6,1)-column constant vregs)
    s1 = ftab_ref[c, COL_S1]
    s2 = ftab_ref[c, COL_S2]
    bias = ftab_ref[c, COL_BIAS]
    low = ftab_ref[c, COL_LOW]
    basis = itab_ref[c]

    x = x_ref[0, 0]                                # (R, 128) f32, sublane-dense
    xs = x * s1

    # LTQSoft forward (x_forward branch) fused with the index count: with
    # deterministic-init params the codebook index of channels 0..4 equals the
    # number of forward thresholds exceeded (validated against _reference_np).
    # Unused threshold slots are +inf, so iterations past a channel's n_val are
    # no-ops.
    xf = jnp.broadcast_to(low, xs.shape)
    cnt = jnp.zeros(xs.shape, jnp.int32)
    for i in range(NMAX):                          # static unroll
        m = xs > ftab_ref[c, COL_TF + i]
        xf = jnp.where(m, ftab_ref[c, COL_STEP + i], xf)
        cnt = cnt + m.astype(jnp.int32)
    # TODO(synk): the straight-through x_backward branch only shapes gradients;
    # its forward contribution cancels exactly, so the forward output is x_forward.
    codes = xf * s2 + bias
    codes_ref[0, 0] = codes

    # indices: accumulate basis-weighted counts into the idx block, which stays
    # VMEM-resident across the 6 channel steps (channel grid axis "arbitrary").
    @pl.when(c == 0)
    def _init():
        idx_ref[...] = jnp.zeros(idx_ref.shape, jnp.int32)

    @pl.when(c != D - 1)
    def _acc():
        idx_ref[0] = idx_ref[0] + cnt * basis

    @pl.when(c == D - 1)
    def _acc_last():
        # Module quirk reproduced: the last channel quantizes with lqt_5 but is
        # indexed with lqt_3, so re-locate the *quantized codes* against lqt_3's
        # two thresholds (baked python scalars) instead of the forward count.
        xi = codes * _CH5_S1
        cnt3 = ((xi > _CH5_T0).astype(jnp.int32) +
                (xi > _CH5_T1).astype(jnp.int32))
        idx_ref[0] = idx_ref[0] + cnt3 * basis


# ----------------------------------------------------------------------------
# Wrapper
# ----------------------------------------------------------------------------
def _pick_row_tile(B, R_total, r_max=R_MAX):
    """Rows (of 128 lanes) per block.

    Must be a multiple of 8 or equal R_total (BlockSpec sublane rule). Prefers
    exact divisors of R_total (no masked tail block) and, when B == 1, at least
    2 row tiles so both v7x TensorCores get a parallel grid program.
    """
    if R_total <= 8:
        return R_total
    target = min(R_total, r_max)
    if B == 1:
        target = min(target, max(8, (R_total + 1) // 2))
    target = max(8, (target // 8) * 8)
    for t in range(target, 7, -8):                 # largest multiple-of-8 divisor
        if R_total % t == 0:
            return t
    return target                                  # ragged tail: Pallas masks OOB rows


def fdq_forward(z):
    """z: (B, 6, H, W) float32 (NCHW). Returns (out (B,6,H,W) f32, indices (B,H,W) i32)."""
    B, C, H, W = z.shape
    assert C == D, f"expected {D} channels, got {C}"
    N = H * W
    x = z.astype(jnp.float32).reshape(B, D, N)     # contiguous reshape: free

    N128 = -(-N // 128) * 128
    if N128 != N:
        # TODO(synk): ragged H*W falls back to a pad + slice copy; a masked tail
        # store inside the kernel would avoid the extra HBM traffic.
        x = jnp.pad(x, ((0, 0), (0, 0), (0, N128 - N)))
    R_total = N128 // 128
    x = x.reshape(B, D, R_total, 128)              # lane-dense view of each channel

    R = _pick_row_tile(B, R_total)
    n_tiles = -(-R_total // R)

    codes, idx = pl.pallas_call(
        _fdq_kernel,
        grid=(B, n_tiles, D),                      # channel axis last -> idx block resident
        in_specs=[
            pl.BlockSpec(memory_space=pltpu.MemorySpace.SMEM),   # ftab (6, NCOL) f32
            pl.BlockSpec(memory_space=pltpu.MemorySpace.SMEM),   # itab (6,)    i32 basis
            pl.BlockSpec((1, 1, R, 128), lambda b, n, c: (b, c, n, 0)),
        ],
        out_specs=[
            pl.BlockSpec((1, 1, R, 128), lambda b, n, c: (b, c, n, 0)),
            pl.BlockSpec((1, R, 128), lambda b, n, c: (b, n, 0)),
        ],
        out_shape=(
            jax.ShapeDtypeStruct((B, D, R_total, 128), jnp.float32),
            jax.ShapeDtypeStruct((B, R_total, 128), jnp.int32),
        ),
        compiler_params=pltpu.CompilerParams(
            dimension_semantics=("parallel", "parallel", "arbitrary"),
            vmem_limit_bytes=32 * 1024 * 1024),
    )(jnp.asarray(_FTAB), jnp.asarray(_ITAB), x)

    codes = codes.reshape(B, D, N128)
    idx = idx.reshape(B, N128)
    if N128 != N:
        codes = codes[:, :, :N]
        idx = idx[:, :N]
    out = codes.reshape(B, D, H, W)                # project_out is Identity (dim == 6)
    indices = idx.reshape(B, H, W)
    return out, indices


# ----------------------------------------------------------------------------
# Independent numpy reference (per-channel exact loops, no sentinel padding)
# ----------------------------------------------------------------------------
def _reference_np(z):
    p8, p5, p4, p3 = (_ltq_params(n) for n in (8, 5, 4, 3))
    q_map = [p8, p8, p5, p4, p4, p5]
    i_map = [p8, p8, p5, p4, p4, p3]
    basis = np.cumprod([1] + LEVELS[:-1])
    z = z.astype(np.float32)
    B, C, H, W = z.shape
    codes = np.zeros_like(z)
    idx = np.zeros((B, H, W), np.int64)
    for c in range(C):
        pq, pi = q_map[c], i_map[c]
        xc = z[:, c] * pq['scale1']
        xf = np.full_like(xc, pq['low'])
        for i in range(pq['n_val']):
            xf = np.where(xc > pq['tf'][i], pq['step'][i], xf)
        cc = xf * pq['scale2'] + pq['bias']
        codes[:, c] = cc
        xi = cc * pi['scale1']
        cnt = np.zeros_like(xc, np.int64)
        for i in range(pi['n_val']):
            cnt += (xi > pi['tf'][i]).astype(np.int64)
        idx += cnt * int(basis[c])
    return codes, idx.astype(np.int32)


if __name__ == "__main__":
    key = jax.random.PRNGKey(0)
    z = jax.random.normal(key, (2, 6, 16, 16), jnp.float32)   # B=2, C=6, H=W=16

    out, indices = jax.jit(fdq_forward)(z)
    jax.block_until_ready((out, indices))

    out_ref, idx_ref = _reference_np(np.asarray(z))

    assert out.shape == z.shape and out.dtype == jnp.float32
    assert indices.shape == (2, 16, 16) and indices.dtype == jnp.int32
    assert np.allclose(np.asarray(out), out_ref, atol=1e-6), "codes mismatch vs reference"
    assert np.array_equal(np.asarray(indices), idx_ref), "indices mismatch vs reference"
    assert int(indices.min()) >= 0 and int(indices.max()) < int(np.prod(LEVELS))
    print("KERNEL_OK")
</pallas_src>

<mosaic_0001>
module attributes {stable_mosaic.version = 11 : i64} {
  func.func @_fdq_kernel(%arg0: i32, %arg1: i32, %arg2: i32, %arg3: memref<6x18xf32, #tpu.memory_space<smem>>, %arg4: memref<6xi32, #tpu.memory_space<smem>>, %arg5: memref<1x1x2x128xf32, #tpu.memory_space<vmem>>, %arg6: memref<1x1x2x128xf32, #tpu.memory_space<vmem>>, %arg7: memref<1x2x128xi32, #tpu.memory_space<vmem>>) attributes {dimension_semantics = [#tpu.dimension_semantics<parallel>, #tpu.dimension_semantics<parallel>, #tpu.dimension_semantics<arbitrary>], iteration_bounds = array<i64: 2, 1, 6>, scalar_prefetch = 0 : i64, scratch_operands = 0 : i64, tpu.core_type = #tpu.core_type<tc>, window_params = [{transform_indices = @transform_0, window_bounds = array<i64: 6, 18>}, {transform_indices = @transform_1, window_bounds = array<i64: 6>}, {transform_indices = @transform_2, window_bounds = array<i64: 1, 1, 2, 128>}, {transform_indices = @transform_3, window_bounds = array<i64: 1, 1, 2, 128>}, {transform_indices = @transform_4, window_bounds = array<i64: 1, 2, 128>}]} {
    %0 = arith.index_cast %arg2 : i32 to index
    %c14 = arith.constant 14 : index
    %1 = memref.load %arg3[%0, %c14] : memref<6x18xf32, #tpu.memory_space<smem>>
    %2 = arith.index_cast %arg2 : i32 to index
    %c15 = arith.constant 15 : index
    %3 = memref.load %arg3[%2, %c15] : memref<6x18xf32, #tpu.memory_space<smem>>
    %4 = arith.index_cast %arg2 : i32 to index
    %c16 = arith.constant 16 : index
    %5 = memref.load %arg3[%4, %c16] : memref<6x18xf32, #tpu.memory_space<smem>>
    %6 = arith.index_cast %arg2 : i32 to index
    %c17 = arith.constant 17 : index
    %7 = memref.load %arg3[%6, %c17] : memref<6x18xf32, #tpu.memory_space<smem>>
    %8 = arith.index_cast %arg2 : i32 to index
    %9 = memref.load %arg4[%8] : memref<6xi32, #tpu.memory_space<smem>>
    %c0 = arith.constant 0 : index
    %c0_0 = arith.constant 0 : index
    %c0_1 = arith.constant 0 : index
    %c0_2 = arith.constant 0 : index
    %10 = vector.load %arg5[%c0, %c0_0, %c0_1, %c0_2] : memref<1x1x2x128xf32, #tpu.memory_space<vmem>>, vector<1x1x2x128xf32>
    %11 = vector.shape_cast %10 : vector<1x1x2x128xf32> to vector<2x128xf32>
    %12 = vector.broadcast %1 : f32 to vector<2x128xf32>
    %13 = arith.mulf %11, %12 : vector<2x128xf32>
    %14 = vector.broadcast %7 : f32 to vector<2x128xf32>
    %c0_i32 = arith.constant 0 : i32
    %15 = vector.broadcast %c0_i32 : i32 to vector<2x128xi32>
    %16 = arith.index_cast %arg2 : i32 to index
    %c0_3 = arith.constant 0 : index
    %17 = memref.load %arg3[%16, %c0_3] : memref<6x18xf32, #tpu.memory_space<smem>>
    %18 = vector.broadcast %17 : f32 to vector<2x128xf32>
    %19 = arith.cmpf ogt, %13, %18 : vector<2x128xf32>
    %20 = arith.index_cast %arg2 : i32 to index
    %c7 = arith.constant 7 : index
    %21 = memref.load %arg3[%20, %c7] : memref<6x18xf32, #tpu.memory_space<smem>>
    %22 = vector.broadcast %21 : f32 to vector<2x128xf32>
    %23 = arith.select %19, %22, %14 : vector<2x128xi1>, vector<2x128xf32>
    %24 = arith.extui %19 : vector<2x128xi1> to vector<2x128xi32>
    %25 = arith.addi %15, %24 : vector<2x128xi32>
    %26 = arith.index_cast %arg2 : i32 to index
    %c1 = arith.constant 1 : index
    %27 = memref.load %arg3[%26, %c1] : memref<6x18xf32, #tpu.memory_space<smem>>
    %28 = vector.broadcast %27 : f32 to vector<2x128xf32>
    %29 = arith.cmpf ogt, %13, %28 : vector<2x128xf32>
    %30 = arith.index_cast %arg2 : i32 to index
    %c8 = arith.constant 8 : index
    %31 = memref.load %arg3[%30, %c8] : memref<6x18xf32, #tpu.memory_space<smem>>
    %32 = vector.broadcast %31 : f32 to vector<2x128xf32>
    %33 = arith.select %29, %32, %23 : vector<2x128xi1>, vector<2x128xf32>
    %34 = arith.extui %29 : vector<2x128xi1> to vector<2x128xi32>
    %35 = arith.addi %25, %34 : vector<2x128xi32>
    %36 = arith.index_cast %arg2 : i32 to index
    %c2 = arith.constant 2 : index
    %37 = memref.load %arg3[%36, %c2] : memref<6x18xf32, #tpu.memory_space<smem>>
    %38 = vector.broadcast %37 : f32 to vector<2x128xf32>
    %39 = arith.cmpf ogt, %13, %38 : vector<2x128xf32>
    %40 = arith.index_cast %arg2 : i32 to index
    %c9 = arith.constant 9 : index
    %41 = memref.load %arg3[%40, %c9] : memref<6x18xf32, #tpu.memory_space<smem>>
    %42 = vector.broadcast %41 : f32 to vector<2x128xf32>
    %43 = arith.select %39, %42, %33 : vector<2x128xi1>, vector<2x128xf32>
    %44 = arith.extui %39 : vector<2x128xi1> to vector<2x128xi32>
    %45 = arith.addi %35, %44 : vector<2x128xi32>
    %46 = arith.index_cast %arg2 : i32 to index
    %c3 = arith.constant 3 : index
    %47 = memref.load %arg3[%46, %c3] : memref<6x18xf32, #tpu.memory_space<smem>>
    %48 = vector.broadcast %47 : f32 to vector<2x128xf32>
    %49 = arith.cmpf ogt, %13, %48 : vector<2x128xf32>
    %50 = arith.index_cast %arg2 : i32 to index
    %c10 = arith.constant 10 : index
    %51 = memref.load %arg3[%50, %c10] : memref<6x18xf32, #tpu.memory_space<smem>>
    %52 = vector.broadcast %51 : f32 to vector<2x128xf32>
    %53 = arith.select %49, %52, %43 : vector<2x128xi1>, vector<2x128xf32>
    %54 = arith.extui %49 : vector<2x128xi1> to vector<2x128xi32>
    %55 = arith.addi %45, %54 : vector<2x128xi32>
    %56 = arith.index_cast %arg2 : i32 to index
    %c4 = arith.constant 4 : index
    %57 = memref.load %arg3[%56, %c4] : memref<6x18xf32, #tpu.memory_space<smem>>
    %58 = vector.broadcast %57 : f32 to vector<2x128xf32>
    %59 = arith.cmpf ogt, %13, %58 : vector<2x128xf32>
    %60 = arith.index_cast %arg2 : i32 to index
    %c11 = arith.constant 11 : index
    %61 = memref.load %arg3[%60, %c11] : memref<6x18xf32, #tpu.memory_space<smem>>
    %62 = vector.broadcast %61 : f32 to vector<2x128xf32>
    %63 = arith.select %59, %62, %53 : vector<2x128xi1>, vector<2x128xf32>
    %64 = arith.extui %59 : vector<2x128xi1> to vector<2x128xi32>
    %65 = arith.addi %55, %64 : vector<2x128xi32>
    %66 = arith.index_cast %arg2 : i32 to index
    %c5 = arith.constant 5 : index
    %67 = memref.load %arg3[%66, %c5] : memref<6x18xf32, #tpu.memory_space<smem>>
    %68 = vector.broadcast %67 : f32 to vector<2x128xf32>
    %69 = arith.cmpf ogt, %13, %68 : vector<2x128xf32>
    %70 = arith.index_cast %arg2 : i32 to index
    %c12 = arith.constant 12 : index
    %71 = memref.load %arg3[%70, %c12] : memref<6x18xf32, #tpu.memory_space<smem>>
    %72 = vector.broadcast %71 : f32 to vector<2x128xf32>
    %73 = arith.select %69, %72, %63 : vector<2x128xi1>, vector<2x128xf32>
    %74 = arith.extui %69 : vector<2x128xi1> to vector<2x128xi32>
    %75 = arith.addi %65, %74 : vector<2x128xi32>
    %76 = arith.index_cast %arg2 : i32 to index
    %c6 = arith.constant 6 : index
    %77 = memref.load %arg3[%76, %c6] : memref<6x18xf32, #tpu.memory_space<smem>>
    %78 = vector.broadcast %77 : f32 to vector<2x128xf32>
    %79 = arith.cmpf ogt, %13, %78 : vector<2x128xf32>
    %80 = arith.index_cast %arg2 : i32 to index
    %c13 = arith.constant 13 : index
    %81 = memref.load %arg3[%80, %c13] : memref<6x18xf32, #tpu.memory_space<smem>>
    %82 = vector.broadcast %81 : f32 to vector<2x128xf32>
    %83 = arith.select %79, %82, %73 : vector<2x128xi1>, vector<2x128xf32>
    %84 = arith.extui %79 : vector<2x128xi1> to vector<2x128xi32>
    %85 = arith.addi %75, %84 : vector<2x128xi32>
    %86 = vector.broadcast %3 : f32 to vector<2x128xf32>
    %87 = arith.mulf %83, %86 : vector<2x128xf32>
    %88 = vector.broadcast %5 : f32 to vector<2x128xf32>
    %89 = arith.addf %87, %88 : vector<2x128xf32>
    %c0_4 = arith.constant 0 : index
    %c0_5 = arith.constant 0 : index
    %c0_6 = arith.constant 0 : index
    %c0_7 = arith.constant 0 : index
    %90 = vector.load %arg6[%c0_4, %c0_5, %c0_6, %c0_7] : memref<1x1x2x128xf32, #tpu.memory_space<vmem>>, vector<1x1x2x128xf32>
    %91 = vector.shape_cast %90 : vector<1x1x2x128xf32> to vector<2x128xf32>
    %92 = vector.shape_cast %89 : vector<2x128xf32> to vector<1x1x2x128xf32>
    tpu.vector_store %arg6[%c0_4, %c0_5, %c0_6, %c0_7], %92 {strides = array<i32>} : memref<1x1x2x128xf32, #tpu.memory_space<vmem>>, vector<1x1x2x128xf32>,
    %c0_i32_8 = arith.constant 0 : i32
    %93 = arith.cmpi eq, %arg2, %c0_i32_8 : i32
    %94 = arith.extui %93 : i1 to i32
    %c0_i32_9 = arith.constant 0 : i32
    %95 = arith.cmpi ne, %94, %c0_i32_9 : i32
    scf.if %95 {
      %c0_i32_13 = arith.constant 0 : i32
      %102 = vector.broadcast %c0_i32_13 : i32 to vector<1x2x128xi32>
      %c0_14 = arith.constant 0 : index
      %c0_15 = arith.constant 0 : index
      %c0_16 = arith.constant 0 : index
      %103 = vector.load %arg7[%c0_14, %c0_15, %c0_16] : memref<1x2x128xi32, #tpu.memory_space<vmem>>, vector<1x2x128xi32>
      tpu.vector_store %arg7[%c0_14, %c0_15, %c0_16], %102 {strides = array<i32>} : memref<1x2x128xi32, #tpu.memory_space<vmem>>, vector<1x2x128xi32>,
    } else {
    }
    %c5_i32 = arith.constant 5 : i32
    %96 = arith.cmpi ne, %arg2, %c5_i32 : i32
    %97 = arith.extui %96 : i1 to i32
    %c0_i32_10 = arith.constant 0 : i32
    %98 = arith.cmpi ne, %97, %c0_i32_10 : i32
    scf.if %98 {
      %c0_13 = arith.constant 0 : index
      %c0_14 = arith.constant 0 : index
      %c0_15 = arith.constant 0 : index
      %102 = vector.load %arg7[%c0_13, %c0_14, %c0_15] : memref<1x2x128xi32, #tpu.memory_space<vmem>>, vector<1x2x128xi32>
      %103 = vector.shape_cast %102 : vector<1x2x128xi32> to vector<2x128xi32>
      %104 = vector.broadcast %9 : i32 to vector<2x128xi32>
      %105 = arith.muli %85, %104 : vector<2x128xi32>
      %106 = arith.addi %103, %105 : vector<2x128xi32>
      %c0_16 = arith.constant 0 : index
      %c0_17 = arith.constant 0 : index
      %c0_18 = arith.constant 0 : index
      %107 = vector.load %arg7[%c0_16, %c0_17, %c0_18] : memref<1x2x128xi32, #tpu.memory_space<vmem>>, vector<1x2x128xi32>
      %108 = vector.shape_cast %107 : vector<1x2x128xi32> to vector<2x128xi32>
      %109 = vector.shape_cast %106 : vector<2x128xi32> to vector<1x2x128xi32>
      tpu.vector_store %arg7[%c0_16, %c0_17, %c0_18], %109 {strides = array<i32>} : memref<1x2x128xi32, #tpu.memory_space<vmem>>, vector<1x2x128xi32>,
    } else {
    }
    %c5_i32_11 = arith.constant 5 : i32
    %99 = arith.cmpi eq, %arg2, %c5_i32_11 : i32
    %100 = arith.extui %99 : i1 to i32
    %c0_i32_12 = arith.constant 0 : i32
    %101 = arith.cmpi ne, %100, %c0_i32_12 : i32
    scf.if %101 {
      %cst = arith.constant 1.000000e+00 : f32
      %102 = vector.broadcast %cst : f32 to vector<2x128xf32>
      %103 = arith.mulf %89, %102 : vector<2x128xf32>
      %cst_13 = arith.constant -5.000000e-01 : f32
      %104 = vector.broadcast %cst_13 : f32 to vector<2x128xf32>
      %105 = arith.cmpf ogt, %103, %104 : vector<2x128xf32>
      %106 = arith.extui %105 : vector<2x128xi1> to vector<2x128xi32>
      %cst_14 = arith.constant 5.000000e-01 : f32
      %107 = vector.broadcast %cst_14 : f32 to vector<2x128xf32>
      %108 = arith.cmpf ogt, %103, %107 : vector<2x128xf32>
      %109 = arith.extui %108 : vector<2x128xi1> to vector<2x128xi32>
      %110 = arith.addi %106, %109 : vector<2x128xi32>
      %c0_15 = arith.constant 0 : index
      %c0_16 = arith.constant 0 : index
      %c0_17 = arith.constant 0 : index
      %111 = vector.load %arg7[%c0_15, %c0_16, %c0_17] : memref<1x2x128xi32, #tpu.memory_space<vmem>>, vector<1x2x128xi32>
      %112 = vector.shape_cast %111 : vector<1x2x128xi32> to vector<2x128xi32>
      %113 = vector.broadcast %9 : i32 to vector<2x128xi32>
      %114 = arith.muli %110, %113 : vector<2x128xi32>
      %115 = arith.addi %112, %114 : vector<2x128xi32>
      %c0_18 = arith.constant 0 : index
      %c0_19 = arith.constant 0 : index
      %c0_20 = arith.constant 0 : index
      %116 = vector.load %arg7[%c0_18, %c0_19, %c0_20] : memref<1x2x128xi32, #tpu.memory_space<vmem>>, vector<1x2x128xi32>
      %117 = vector.shape_cast %116 : vector<1x2x128xi32> to vector<2x128xi32>
      %118 = vector.shape_cast %115 : vector<2x128xi32> to vector<1x2x128xi32>
      tpu.vector_store %arg7[%c0_18, %c0_19, %c0_20], %118 {strides = array<i32>} : memref<1x2x128xi32, #tpu.memory_space<vmem>>, vector<1x2x128xi32>,
    } else {
    }
    return
  }
  func.func @transform_0(%arg0: i32, %arg1: i32, %arg2: i32) -> (i32, i32) {
    %c0_i32 = arith.constant 0 : i32
    %c0_i32_0 = arith.constant 0 : i32
    %c0_i32_1 = arith.constant 0 : i32
    return %c0_i32, %c0_i32_0 : i32, i32
  }
  func.func @transform_1(%arg0: i32, %arg1: i32, %arg2: i32) -> i32 {
    %c0_i32 = arith.constant 0 : i32
    %c0_i32_0 = arith.constant 0 : i32
    return %c0_i32 : i32
  }
  func.func @transform_2(%arg0: i32, %arg1: i32, %arg2: i32) -> (i32, i32, i32, i32) {
    %c0_i32 = arith.constant 0 : i32
    %c0_i32_0 = arith.constant 0 : i32
    return %arg0, %arg2, %arg1, %c0_i32 : i32, i32, i32, i32
  }
  func.func @transform_3(%arg0: i32, %arg1: i32, %arg2: i32) -> (i32, i32, i32, i32) {
    %c0_i32 = arith.constant 0 : i32
    %c0_i32_0 = arith.constant 0 : i32
    return %arg0, %arg2, %arg1, %c0_i32 : i32, i32, i32, i32
  }
  func.func @transform_4(%arg0: i32, %arg1: i32, %arg2: i32) -> (i32, i32, i32) {
    %c0_i32 = arith.constant 0 : i32
    %c0_i32_0 = arith.constant 0 : i32
    return %arg0, %arg1, %c0_i32 : i32, i32, i32
  }
}

</mosaic_0001>

<bundles_post_ra>
// kernel: fdq_forward.1
= control target key start
LH: loop header
LB: loop body
LE: loop exit
PB: predicated region body
PF: predicated region fallthrough
CT: control target
= control target key end

     0   :  { %s937_s0 = inlined_call_operand.vmem [shape: f32[6,18], index: 0, kind: input, shape index: {}]   ;;  %s938_s1 = inlined_call_operand.vmem [shape: s32[6], index: 1, kind: input, shape index: {}]   ;;  %s939_s2 = inlined_call_operand.vmem [shape: f32[2,6,2,128], index: 2, kind: input, shape index: {}]   ;;  %s940_s3 = inlined_call_operand.vmem [shape: f32[2,6,2,128], index: 3, kind: output, shape index: {0}]   ;;  %s941_s4 = inlined_call_operand.vmem [shape: s32[2,2,128], index: 4, kind: output, shape index: {1}]  }
   0x1   :  { %946 = sst [smem:[#allocation8_spill]] %s937_s0 }
   0x2   :  { %10 = vsyncpa [#allocation3], 0 }
   0x3   :  { %11 = vsyncpa [#allocation5], 0  ;;  %s773_s15 = smov 0   ;;  %s775_s16 = smov 0  }
   0x4   :  { %s777_s17 = smov 0   ;;  %s779_s18 = smov 0  }
   0x5   :  { %s781_s19 = smov 0  }
   0x6 LB: > { %s582_s20 = sadd.s32 4294967295, %s741_s19   ;;  %s29_s21 = sadd.s32 1, %s733_s17  ;;  %s741_s19 = sphi %s781_s19, %s17_s19   ;;  %s737_s18 = sphi %s779_s18, %s958_s18   ;;  %s733_s17 = sphi %s777_s17, %s957_s17   ;;  %s729_s16 = sphi %s775_s16, %s956_s16   ;;  %s725_s15 = sphi %s773_s15, %s955_s15  }
   0x7   : > { %p30_p0 = scmp.ge.s32.totalorder %s29_s21, 6  ;;  %s36_s22 = sadd.s32 1, %s737_s18 }
   0x8   : > { %p584_p1 = scmp.ge.s32.totalorder %s741_s19, 1  ;;  %p171_p2 = scmp.lt.s32.totalorder %s741_s19, 13 }
   0x9   : > { %s960_s21 = smov (%p30_p0, %s29_s21), 0  ;;  %s962_s22 = smov (!%p30_p0, %s36_s22), %s737_s18 }
   0xa   : > { %p806_p3 = pnand %p584_p1, %p171_p2  ;;  %p38_p4 = scmp.ge.s32.totalorder %s962_s22, 2 }
   0xb   : > { %p810_p5 = scmp.eq.s32.totalorder %s582_s20, 0  ;;  %s949_s0 = sld [smem:[#allocation8_spill]] }
   0xc   : > { %s947_s23 = scalar_select %p806_p3, 1, 0 }
   0xd   : > { %s948_s24 = scalar_select %p810_p5, 1, 0 }
   0xe   : > { %p609_p6 = pneg %p806_p3  ;;  %s964_s22 = smov (%p38_p4, %s962_s22), 0 }
   0xf   : > { %s195_s5 = sshll.u32 %s938_s1, 4  ;;  %s196_s5 = int_to_ptr.vmem [resolvable:$true] %s195_s5 }
  0x10   : > { %p823_p7 = pnand %p810_p5, %p609_p6 }
  0x11   : > { %s184_s27 = sshll.u32 %s949_s0, 4  ;;  %s185_s27 = int_to_ptr.vmem [resolvable:$true] %s184_s27 }
  0x12   : > { %s665_s6 = scalar_lea.vmem %s185_s27, 128  ;;  %p667_p9 = pneg %p823_p7 }
  0x13   : > { %p666_p8 = scmp.ne.s32.totalorder %s185_s27, %s665_s6  ;;  %p673_p12 = scmp.lt.s32.totalorder %s185_s27, %s185_s27 }
  0x14   : > { %p674_p13 = scmp.lt.s32.totalorder %s665_s6, %s665_s6 }
  0x15   : > { %p668_p10 = pnand %p667_p9, %p666_p8 }
  0x16   : > { %p675_p0 = por %p674_p13, %p673_p12 }
  0x17   : > { %p669_p11 = pneg %p668_p10 }
  0x19   : > { %p676_p1 = pnand %p675_p0, %p669_p11 }
  0x1b   : > { %679 = shalt.err (!%p676_p1)
}
  0x1c   : > { %s743_s7 = smov [#allocation2]   ;;  %s680_s8 = scalar_lea.vmem %s196_s5, 16 }
  0x1d   : > { %612 = dma.vmem_to_smem (!%p823_p7), %s185_s27, 128, %s743_s7, [#allocation3]  }
  0x1e   : > { %p681_p2 = scmp.ne.s32.totalorder %s196_s5, %s680_s8  ;;  %p688_p5 = scmp.lt.s32.totalorder %s196_s5, %s196_s5 }
  0x1f   : > { %p689_p3 = scmp.lt.s32.totalorder %s680_s8, %s680_s8 }
  0x20   : > { %p683_p4 = pnand %p681_p2, %p667_p9 }
  0x21   : > { %p690_p8 = por %p689_p3, %p688_p5 }
  0x22   : > { %p684_p6 = pneg %p683_p4 }
  0x24   : > { %p691_p10 = pnand %p690_p8, %p684_p6 }
  0x26   : > { %694 = shalt.err (!%p691_p10)
}
  0x27   : > { %s744_s9 = smov [#allocation4]   ;;  %p951_p11 = scmp.ne.s32.totalorder %s947_s23, 0 }
  0x28   : > { %615 = dma.vmem_to_smem (!%p823_p7), %s196_s5, 16, %s744_s9, [#allocation5]  }
  0x29   : > { %222 = sbr.rel (%p951_p11) target bundleno = 109 (0x6d), region = 32  ;;  %p952_p12 = scmp.ne.s32.totalorder (!%p951_p11), %s948_s24, 0 }
  0x30   : > { %716 = dma.done.wait (%p952_p12), [#allocation3], 128  }
  0x31   : > { %718 = vsyncadd (%p952_p12), [#allocation3], 4294967168 }
  0x32   : > { %720 = dma.done.wait (%p952_p12), [#allocation5], 16  }
  0x33   : > { %722 = vsyncadd (%p952_p12), [#allocation5], 4294967280 }
  0x34   : > { %232 = sfence }
  0x35   : > { %p272_p3 = scmp.lt.s32.totalorder %s729_s16, 1  ;;  %p274_p5 = scmp.lt.s32.totalorder %s725_s15, 5  ;;  %v745_v6 = vmov 0  }
  0x36   : > { %s849_s10 = sshll.u32 %s725_s15, 7  ;;  %s852_s11 = sld [smem:[#allocation4 + %s725_s15]] }
  0x37   : > { %s966_s16 = smov (!%p272_p3, %s729_s16), 1  ;;  %s302_s25 = sadd.s32 14, %s849_s10 }
  0x38   : > { %s275_s12 = scalar_select %p274_p5, %s725_s15, 5 }
  0x39   : > { %s600_s13 = smul.u32 6, %s966_s16  ;;  %s593_s14 = sshll.u32 %s966_s16, 1 }
  0x3a   : > { %s859_s24 = scalar_lea.vmem %s941_s4, %s593_s14  ;;  %s303_s27 = sld [smem:[#allocation2 + %s302_s25]] }
  0x3b   : > { %s862_s26 = sadd.s32 %s600_s13, %s275_s12  ;;  %s304_s29 = sadd.s32 15, %s849_s10 }
  0x3c   : > { %s945_s28 = sshll.u32 %s862_s26, 1  ;;  %s871_s6 = sld [smem:[#allocation2 + %s304_s29]] }
  0x3d   : > { %s282_s16 = scalar_lea.vmem %s939_s2, %s945_s28  ;;  %s308_s8 = sadd.s32 17, %s849_s10 }
  0x3e   : > { %s309_s9 = sld [smem:[#allocation2 + %s308_s8]]  ;;  %v311_v0 = vld [vmem:[%s282_s16] sm:$0x3]  ;;  %s318_s13 = sadd.s32 7, %s849_s10 }
  0x3f   : > { %s315_s12 = sld [smem:[#allocation2 + %s849_s10]]  ;;  %s323_s14 = sadd.s32 1, %s849_s10 }
  0x40   : > { %v312_v1 = vstv %s303_s27  ;;  %s319_s20 = sld [smem:[#allocation2 + %s318_s13]]  ;;  %s327_s25 = sadd.s32 8, %s849_s10 }
  0x41   : > { %s324_s23 = sld [smem:[#allocation2 + %s323_s14]]  ;;  %v313_v2 = vmul.f32 %v312_v1, %v311_v0  ;;  %s333_s30 = sadd.s32 2, %s849_s10 }
  0x42   : > { %s328_s5 = sld [smem:[#allocation2 + %s327_s25]]  ;;  %s337_s28 = sadd.s32 9, %s849_s10  ;;  %v383_v35 = vstv %s871_s6 }
  0x43   : > { %s334_s29 = sld [smem:[#allocation2 + %s333_s30]]  ;;  %s343_s0 = sadd.s32 3, %s849_s10 }
  0x44   : > { %v314_v3 = vstv %s309_s9  ;;  %s882_s16 = sld [smem:[#allocation2 + %s337_s28]]  ;;  %s347_s8 = sadd.s32 10, %s849_s10 }
  0x45   : > { %v316_v4 = vstv %s315_s12  ;;  %s884_s27 = sld [smem:[#allocation2 + %s343_s0]]  ;;  %s353_s7 = sadd.s32 4, %s849_s10 }
  0x46   : > { %vm317_vm0 = vcmp.gt.f32.partialorder %v313_v2, %v316_v4  ;;  %v320_v5 = vstv %s319_s20  ;;  %s888_s13 = sld [smem:[#allocation2 + %s347_s8]]  ;;  %s357_s28 = sadd.s32 11, %s849_s10 }
  0x47   : > { %v322_v7 = vsel %vm317_vm0, 1, %v745_v6  ;;  %v325_v8 = vstv %s324_s23  ;;  %s890_s14 = sld [smem:[#allocation2 + %s353_s7]]  ;;  %v321_v9 = vsel %vm317_vm0, %v320_v5, %v314_v3  ;;  %s363_s0 = sadd.s32 5, %s849_s10 }
  0x48   : > { %vm326_vm1 = vcmp.gt.f32.partialorder %v313_v2, %v325_v8  ;;  %v329_v10 = vstv %s328_s5  ;;  %s358_s9 = sld [smem:[#allocation2 + %s357_s28]]  ;;  %s367_s20 = sadd.s32 12, %s849_s10 }
  0x49   : > { %v331_v11 = vsel %vm326_vm1, 1, %v745_v6  ;;  %v335_v12 = vstv %s334_s29  ;;  %s364_s12 = sld [smem:[#allocation2 + %s363_s0]]  ;;  %v330_v13 = vsel %vm326_vm1, %v329_v10, %v321_v9  ;;  %s373_s7 = sadd.s32 6, %s849_s10 }
  0x4a   : > { %v332_v14 = vadd.s32 %v331_v11, %v322_v7  ;;  %vm336_vm2 = vcmp.gt.f32.partialorder %v313_v2, %v335_v12  ;;  %v339_v15 = vstv %s882_s16  ;;  %s368_s23 = sld [smem:[#allocation2 + %s367_s20]]  ;;  %s953_s30 = sadd.s32 16, %s849_s10 }
  0x4b   : > { %v341_v16 = vsel %vm336_vm2, 1, %v745_v6  ;;  %v345_v17 = vstv %s884_s27  ;;  %s374_s25 = sld [smem:[#allocation2 + %s373_s7]]  ;;  %v340_v18 = vsel %vm336_vm2, %v339_v15, %v330_v13  ;;  %s377_s5 = sadd.s32 13, %s849_s10 }
  0x4c   : > { %s900_s8 = sld [smem:[#allocation2 + %s953_s30]]  ;;  %v342_v19 = vadd.s32 %v341_v16, %v332_v14  ;;  %vm346_vm3 = vcmp.gt.f32.partialorder %v313_v2, %v345_v17  ;;  %v349_v20 = vstv %s888_s13  ;;  %s954_s10 = sshll.u32 %s862_s26, 1 }
  0x4d   : > { %v351_v21 = vsel %vm346_vm3, 1, %v745_v6  ;;  %v355_v22 = vstv %s890_s14  ;;  %s378_s29 = sld [smem:[#allocation2 + %s377_s5]]  ;;  %v350_v23 = vsel %vm346_vm3, %v349_v20, %v340_v18  ;;  %s293_s13 = scalar_lea.vmem %s940_s3, %s954_s10 }
  0x4e   : > { %v352_v24 = vadd.s32 %v351_v21, %v342_v19  ;;  %vm356_vm4 = vcmp.gt.f32.partialorder %v313_v2, %v355_v22  ;;  %v359_v25 = vstv %s358_s9  ;;  %p595_p7 = scmp.ne.s32.totalorder %s725_s15, 0 }
  0x4f   : > { %v361_v26 = vsel %vm356_vm4, 1, %v745_v6  ;;  %v365_v27 = vstv %s364_s12  ;;  %v360_v28 = vsel %vm356_vm4, %v359_v25, %v350_v23  ;;  %v746_v43 = vmov (!%p595_p7), 0  }
  0x50   : > { %v362_v29 = vadd.s32 %v361_v26, %v352_v24  ;;  %vm366_vm5 = vcmp.gt.f32.partialorder %v313_v2, %v365_v27  ;;  %v369_v30 = vstv %s368_s23  ;;  %392 = vst [vmem:[%s859_s24] sm:$0x3] (!%p595_p7), %v746_v43 }
  0x51   : > { %v371_v31 = vsel %vm366_vm5, 1, %v745_v6  ;;  %v375_v32 = vstv %s374_s25  ;;  %v370_v33 = vsel %vm366_vm5, %v369_v30, %v360_v28 }
  0x52   : > { %v372_v34 = vadd.s32 %v371_v31, %v362_v29  ;;  %vm376_vm6 = vcmp.gt.f32.partialorder %v313_v2, %v375_v32  ;;  %v385_v40 = vstv %s900_s8 }
  0x53   : > { %v379_v36 = vstv %s378_s29  ;;  %v381_v37 = vsel %vm376_vm6, 1, %v745_v6  ;;  %391 = sbr.rel (%p595_p7) target bundleno = 90 (0x5a), region = 44 }
  0x54   : > { %v380_v38 = vsel %vm376_vm6, %v379_v36, %v370_v33  ;;  %v382_v39 = vadd.s32 %v381_v37, %v372_v34 }
  0x55   : > { %v384_v41 = vmul.f32 %v383_v35, %v380_v38 }
  0x57   : > { %v386_v42 = vadd.f32 %v385_v40, %v384_v41 }
  0x59   : > { %387 = vst [vmem:[%s293_s13] sm:$0x3] %v386_v42 }
  0x5a PF: > { %p596_p9 = scmp.eq.s32.totalorder %s725_s15, 5 }
  0x5b   : > { %v397_v44 = vld [vmem:[%s859_s24] sm:$0x3] (!%p596_p9)  ;;  %v398_v45 = vstv (!%p596_p9), %s852_s11 }
  0x5c   : > { %396 = sbr.rel (%p596_p9) target bundleno = 99 (0x63), region = 48  ;;  %v399_v46 = vmul.u32 (!%p596_p9), %v398_v45, %v382_v39 }
  0x5e   : > { %v400_v47 = vadd.s32 (!%p596_p9), %v399_v46, %v397_v44 }
  0x60   : > { %401 = vst [vmem:[%s859_s24] sm:$0x3] (!%p596_p9), %v400_v47 }
  0x63 PF: > { %p597_p13 = scmp.ne.s32.totalorder %s725_s15, 5 }
  0x64   : > { %vm406_vm7 = vcmp.gt.f32.partialorder (!%p597_p13), %v386_v42, -0.5  ;;  %vm408_vm8 = vcmp.gt.f32.partialorder (!%p597_p13), %v386_v42, 0.5  ;;  %v747_v48 = vmov (!%p597_p13), 0   ;;  %v412_v51 = vstv (!%p597_p13), %s852_s11 }
  0x65   : > { %405 = sbr.rel (%p597_p13) target bundleno = 109 (0x6d), region = 52  ;;  %v407_v49 = vsel (!%p597_p13), %vm406_vm7, 1, %v747_v48  ;;  %v409_v50 = vsel (!%p597_p13), %vm408_vm8, 1, %v747_v48 }
  0x66   : > { %v410_v52 = vadd.s32 (!%p597_p13), %v409_v50, %v407_v49 }
  0x67   : > { %v411_v53 = vld [vmem:[%s859_s24] sm:$0x3] (!%p597_p13) }
  0x68   : > { %v413_v54 = vmul.u32 (!%p597_p13), %v412_v51, %v410_v52 }
  0x6a   : > { %v414_v55 = vadd.s32 (!%p597_p13), %v413_v54, %v411_v53 }
  0x6c   : > { %415 = vst [vmem:[%s859_s24] sm:$0x3] %v414_v55 }
  0x6d PF: > { %s17_s19 = sadd.s32 1, %s741_s19   ;;  %s955_s15 = smov %s733_s17 }
  0x6e   : > { %p14_p0 = scmp.ge.s32.totalorder %s17_s19, 14   ;;  %s956_s16 = smov %s737_s18 }
  0x6f   : > { %s957_s17 = smov %s960_s21  ;;  %s958_s18 = smov %s964_s22 }
  0x70   :  { %16 = sbr.rel (!%p14_p0) target bundleno = 6 (0x6), region = 95 }
  0x77   :  { %469 = vsyncpa [#allocation3], 1 }
  0x78   :  { %471 = vsyncpa [#allocation3 + $0x1], 1 }
  0x79   :  { %472 = vsyncpa [#allocation5], 1 }

</bundles_post_ra>
